<compile_context>
chip_gen: v6e
topology: v6e:2x2x1
jax: 0.10.0
libtpu: 0.0.40
codegen_flags: <defaults>
</compile_context>

<pallas_src>
import functools

import jax
import jax.numpy as jnp
from jax.experimental import pallas as pl
from jax.experimental.pallas import tpu as pltpu


def _round_up(x, m):
    return ((x + m - 1) // m) * m


# ----------------------------- Pallas kernel ------------------------------ #

def _edge_mlp_kernel(ea_ref, src_ref, dst_ref, ug_ref,
                     w0e_ref, w0s_ref, w0d_ref, w0u_ref, b0_ref,
                     w1_ref, b1_ref,
                     w2_ref, b2_ref,
                     o_ref):
    """One edge tile of: Linear -> SiLU -> Linear -> SiLU -> Linear.

    Layer 0's concat([edge_attr, src, dest, u[batch]]) @ W0 is computed as
    four partial matmuls with W0 split row-wise (concat fusion).  MXU inputs
    are bf16, accumulation is f32; elementwise math stays in f32.
    """
    bf16 = jnp.bfloat16

    # layer 0 (fused concat): three [TE,H]@[H,H] + one [TE,DGp]@[DGp,H] + bias
    h = jnp.dot(ea_ref[...].astype(bf16), w0e_ref[...],
                preferred_element_type=jnp.float32)
    h = h + jnp.dot(src_ref[...].astype(bf16), w0s_ref[...],
                    preferred_element_type=jnp.float32)
    h = h + jnp.dot(dst_ref[...].astype(bf16), w0d_ref[...],
                    preferred_element_type=jnp.float32)
    h = h + jnp.dot(ug_ref[...].astype(bf16), w0u_ref[...],
                    preferred_element_type=jnp.float32)
    h = h + b0_ref[...]
    h = h * jax.nn.sigmoid(h)                         # SiLU (f32)

    # layer 1
    h = jnp.dot(h.astype(bf16), w1_ref[...],
                preferred_element_type=jnp.float32) + b1_ref[...]
    h = h * jax.nn.sigmoid(h)                         # SiLU (f32)

    # layer 2 (no activation); output lanes padded to 128 -> dense stores
    o_ref[...] = (jnp.dot(h.astype(bf16), w2_ref[...],
                          preferred_element_type=jnp.float32)
                  + b2_ref[...]).astype(o_ref.dtype)


# ------------------------------ Pallas wrapper ----------------------------- #

def edge_mlp_pallas(edge_attr, src, dest, u_gathered, params, *, tile_e=512):
    """Fused edge MLP: inputs [E, H] x3 and [E, Dg] -> output [E, H]."""
    (w0, b0), (w1, b1), (w2, b2) = params
    E, H = edge_attr.shape
    dg = u_gathered.shape[1]
    assert w0.shape[0] == 3 * H + dg

    # -------- tile / padding sizes -------- #
    tile_e = max(8, min(tile_e, _round_up(E, 8)))   # don't over-pad tiny E
    tile_e = _round_up(tile_e, 8)
    E_pad = _round_up(E, tile_e)
    DG_pad = _round_up(dg, 8)                       # pad the narrow 'u' block
    N_pad = _round_up(H, 128)                       # lane-dense output stores

    def pad_rows(x):
        return jnp.pad(x, ((0, E_pad - E), (0, 0))) if E_pad != E else x

    ea = pad_rows(edge_attr)
    sr = pad_rows(src)
    de = pad_rows(dest)
    ug = pad_rows(u_gathered)
    if DG_pad != dg:
        ug = jnp.pad(ug, ((0, 0), (0, DG_pad - dg)))

    # split layer-0 weight row-wise (concat order: edge_attr, src, dest, u)
    bf16 = jnp.bfloat16
    w0e = w0[:H].astype(bf16)
    w0s = w0[H:2 * H].astype(bf16)
    w0d = w0[2 * H:3 * H].astype(bf16)
    w0u = w0[3 * H:]
    if DG_pad != dg:
        w0u = jnp.pad(w0u, ((0, DG_pad - dg), (0, 0)))
    w0u = w0u.astype(bf16)
    w1b = w1.astype(bf16)
    # pad final layer to 128 output lanes so stores are unmasked
    w2p = jnp.pad(w2, ((0, 0), (0, N_pad - H))).astype(bf16)
    b2p = jnp.pad(b2, ((0, 0), (0, N_pad - H)))

    grid = (E_pad // tile_e,)

    edge_spec = lambda feat: pl.BlockSpec((tile_e, feat), lambda i: (i, 0))
    full_spec = lambda arr: pl.BlockSpec(arr.shape, lambda i: (0, 0))

    out = pl.pallas_call(
        _edge_mlp_kernel,
        out_shape=jax.ShapeDtypeStruct((E_pad, N_pad), jnp.float32),
        grid_spec=pltpu.PrefetchScalarGridSpec(
            num_scalar_prefetch=0,
            grid=grid,
            in_specs=[
                edge_spec(H), edge_spec(H), edge_spec(H), edge_spec(DG_pad),
                full_spec(w0e), full_spec(w0s), full_spec(w0d), full_spec(w0u),
                full_spec(b0),
                full_spec(w1b), full_spec(b1),
                full_spec(w2p), full_spec(b2p),
            ],
            out_specs=pl.BlockSpec((tile_e, N_pad), lambda i: (i, 0)),
        ),
        compiler_params=pltpu.CompilerParams(
            dimension_semantics=("parallel",)),
    )(ea, sr, de, ug,
      w0e, w0s, w0d, w0u, b0,
      w1b, b1, w2p, b2p)

    return out[:E, :H]


# ----------------------------- EdgeModel glue ------------------------------ #

def init_edge_model_params(key, dim_hidden, n_hidden, dims_g):
    """Parameter init matching the PyTorch module's Linear shapes.

    layer_vec = [3*dim_hidden + dims_g] + n_hidden*[dim_hidden] + [dim_hidden]
    """
    layer_vec = [3 * dim_hidden + dims_g] + n_hidden * [dim_hidden] + [dim_hidden]
    params = []
    for k in range(len(layer_vec) - 1):
        fan_in, fan_out = layer_vec[k], layer_vec[k + 1]
        key, kw, kb = jax.random.split(key, 3)
        bound = 1.0 / jnp.sqrt(fan_in)
        # stored as [in, out] (transposed vs. torch) so the kernel does x @ W + b
        w = jax.random.uniform(kw, (fan_in, fan_out), jnp.float32, -bound, bound)
        b = jax.random.uniform(kb, (1, fan_out), jnp.float32, -bound, bound)
        params.append((w, b))
    return params


@jax.jit
def edge_model_forward(src, dest, edge_attr, u, batch, params):
    # Equivalent to: out = edge_mlp(cat([edge_attr, src, dest, u[batch]], 1))
    # (the concat itself is fused into the Pallas kernel via W0 splitting).
    u_gathered = u[batch]                      # [E, dims_g]
    return edge_mlp_pallas(edge_attr, src, dest, u_gathered, params)
    # TODO(synk): the u=None branch of EdgeModel.forward (no global features)
    # is not exercised here; it would just drop the w0_u partial matmul.


def edge_model_reference(src, dest, edge_attr, u, batch, params,
                         matmul_dtype=jnp.float32):
    """Pure-JAX reference.  matmul_dtype=bf16 mirrors the kernel's MXU casts."""
    x = jnp.concatenate([edge_attr, src, dest, u[batch]], axis=1)
    (w0, b0), (w1, b1), (w2, b2) = params

    def lin(a, w, b):
        return jnp.dot(a.astype(matmul_dtype), w.astype(matmul_dtype),
                       preferred_element_type=jnp.float32) + b

    h = lin(x, w0, b0)
    h = h * jax.nn.sigmoid(h)
    h = lin(h, w1, b1)
    h = h * jax.nn.sigmoid(h)
    return lin(h, w2, b2)


# ---------------------------------- main ----------------------------------- #

if __name__ == "__main__":
    # small, forward-consistent shapes
    dim_hidden = 32       # args.dim_hidden
    n_hidden = 2          # args.n_hidden  -> 3 Linear layers total
    dims_g = 4            # dims['g']
    E = 16                # number of edges
    B = 2                 # number of graphs in the batch

    key = jax.random.PRNGKey(0)
    key, k_src, k_dst, k_ea, k_u, k_b, k_p = jax.random.split(key, 7)

    src = jax.random.normal(k_src, (E, dim_hidden), jnp.float32)
    dest = jax.random.normal(k_dst, (E, dim_hidden), jnp.float32)
    edge_attr = jax.random.normal(k_ea, (E, dim_hidden), jnp.float32)
    u = jax.random.normal(k_u, (B, dims_g), jnp.float32)
    batch = jax.random.randint(k_b, (E,), 0, B, jnp.int32)

    params = tuple(init_edge_model_params(k_p, dim_hidden, n_hidden, dims_g))

    out = edge_model_forward(src, dest, edge_attr, u, batch, params)
    out = jax.block_until_ready(out)
    assert out.shape == (E, dim_hidden), out.shape

    # tight check vs. a reference that applies the same bf16 MXU rounding
    ref_bf16 = edge_model_reference(src, dest, edge_attr, u, batch, params,
                                    matmul_dtype=jnp.bfloat16)
    assert jnp.allclose(out, ref_bf16, atol=2e-3, rtol=2e-3), \
        float(jnp.max(jnp.abs(out - ref_bf16)))

    # loose sanity check vs. the full-f32 reference
    ref_f32 = edge_model_reference(src, dest, edge_attr, u, batch, params)
    assert jnp.allclose(out, ref_f32, atol=1e-1, rtol=1e-1), \
        float(jnp.max(jnp.abs(out - ref_f32)))

    print("KERNEL_OK")
</pallas_src>

<mosaic_0001>
module attributes {stable_mosaic.version = 11 : i64} {
  func.func @_edge_mlp_kernel(%arg0: i32, %arg1: memref<16x32xf32, #tpu.memory_space<vmem>>, %arg2: memref<16x32xf32, #tpu.memory_space<vmem>>, %arg3: memref<16x32xf32, #tpu.memory_space<vmem>>, %arg4: memref<16x8xf32, #tpu.memory_space<vmem>>, %arg5: memref<32x32xbf16, #tpu.memory_space<vmem>>, %arg6: memref<32x32xbf16, #tpu.memory_space<vmem>>, %arg7: memref<32x32xbf16, #tpu.memory_space<vmem>>, %arg8: memref<8x32xbf16, #tpu.memory_space<vmem>>, %arg9: memref<1x32xf32, #tpu.memory_space<vmem>>, %arg10: memref<32x32xbf16, #tpu.memory_space<vmem>>, %arg11: memref<1x32xf32, #tpu.memory_space<vmem>>, %arg12: memref<32x128xbf16, #tpu.memory_space<vmem>>, %arg13: memref<1x128xf32, #tpu.memory_space<vmem>>, %arg14: memref<16x128xf32, #tpu.memory_space<vmem>>) attributes {dimension_semantics = [#tpu.dimension_semantics<parallel>], iteration_bounds = array<i64: 1>, scalar_prefetch = 0 : i64, scratch_operands = 0 : i64, tpu.core_type = #tpu.core_type<tc>, window_params = [{transform_indices = @transform_0, window_bounds = array<i64: 16, 32>}, {transform_indices = @transform_1, window_bounds = array<i64: 16, 32>}, {transform_indices = @transform_2, window_bounds = array<i64: 16, 32>}, {transform_indices = @transform_3, window_bounds = array<i64: 16, 8>}, {pipeline_mode = #tpu.pipeline_mode<synchronous>, transform_indices = @transform_4, window_bounds = array<i64: 32, 32>}, {pipeline_mode = #tpu.pipeline_mode<synchronous>, transform_indices = @transform_5, window_bounds = array<i64: 32, 32>}, {pipeline_mode = #tpu.pipeline_mode<synchronous>, transform_indices = @transform_6, window_bounds = array<i64: 32, 32>}, {pipeline_mode = #tpu.pipeline_mode<synchronous>, transform_indices = @transform_7, window_bounds = array<i64: 8, 32>}, {pipeline_mode = #tpu.pipeline_mode<synchronous>, transform_indices = @transform_8, window_bounds = array<i64: 1, 32>}, {pipeline_mode = #tpu.pipeline_mode<synchronous>, transform_indices = @transform_9, window_bounds = array<i64: 32, 32>}, {pipeline_mode = #tpu.pipeline_mode<synchronous>, transform_indices = @transform_10, window_bounds = array<i64: 1, 32>}, {pipeline_mode = #tpu.pipeline_mode<synchronous>, transform_indices = @transform_11, window_bounds = array<i64: 32, 128>}, {pipeline_mode = #tpu.pipeline_mode<synchronous>, transform_indices = @transform_12, window_bounds = array<i64: 1, 128>}, {transform_indices = @transform_13, window_bounds = array<i64: 16, 128>}]} {
    %c0 = arith.constant 0 : index
    %c0_0 = arith.constant 0 : index
    %0 = vector.load %arg1[%c0, %c0_0] : memref<16x32xf32, #tpu.memory_space<vmem>>, vector<16x32xf32>
    %1 = arith.truncf %0 : vector<16x32xf32> to vector<16x32xbf16>
    %c0_1 = arith.constant 0 : index
    %c0_2 = arith.constant 0 : index
    %2 = vector.load %arg5[%c0_1, %c0_2] : memref<32x32xbf16, #tpu.memory_space<vmem>>, vector<32x32xbf16>
    %cst = arith.constant dense<0.000000e+00> : vector<16x32xf32>
    %3 = tpu.matmul %1, %2, %cst {dimension_numbers = #tpu.dot_dimension_numbers<[1], [0], [0], [1], [0, 0, 1, 1], [], []>} : vector<16x32xbf16>, vector<32x32xbf16>, vector<16x32xf32> -> vector<16x32xf32>
    %c0_3 = arith.constant 0 : index
    %c0_4 = arith.constant 0 : index
    %4 = vector.load %arg2[%c0_3, %c0_4] : memref<16x32xf32, #tpu.memory_space<vmem>>, vector<16x32xf32>
    %5 = arith.truncf %4 : vector<16x32xf32> to vector<16x32xbf16>
    %c0_5 = arith.constant 0 : index
    %c0_6 = arith.constant 0 : index
    %6 = vector.load %arg6[%c0_5, %c0_6] : memref<32x32xbf16, #tpu.memory_space<vmem>>, vector<32x32xbf16>
    %cst_7 = arith.constant dense<0.000000e+00> : vector<16x32xf32>
    %7 = tpu.matmul %5, %6, %cst_7 {dimension_numbers = #tpu.dot_dimension_numbers<[1], [0], [0], [1], [0, 0, 1, 1], [], []>} : vector<16x32xbf16>, vector<32x32xbf16>, vector<16x32xf32> -> vector<16x32xf32>
    %8 = arith.addf %3, %7 : vector<16x32xf32>
    %c0_8 = arith.constant 0 : index
    %c0_9 = arith.constant 0 : index
    %9 = vector.load %arg3[%c0_8, %c0_9] : memref<16x32xf32, #tpu.memory_space<vmem>>, vector<16x32xf32>
    %10 = arith.truncf %9 : vector<16x32xf32> to vector<16x32xbf16>
    %c0_10 = arith.constant 0 : index
    %c0_11 = arith.constant 0 : index
    %11 = vector.load %arg7[%c0_10, %c0_11] : memref<32x32xbf16, #tpu.memory_space<vmem>>, vector<32x32xbf16>
    %cst_12 = arith.constant dense<0.000000e+00> : vector<16x32xf32>
    %12 = tpu.matmul %10, %11, %cst_12 {dimension_numbers = #tpu.dot_dimension_numbers<[1], [0], [0], [1], [0, 0, 1, 1], [], []>} : vector<16x32xbf16>, vector<32x32xbf16>, vector<16x32xf32> -> vector<16x32xf32>
    %13 = arith.addf %8, %12 : vector<16x32xf32>
    %c0_13 = arith.constant 0 : index
    %c0_14 = arith.constant 0 : index
    %14 = vector.load %arg4[%c0_13, %c0_14] : memref<16x8xf32, #tpu.memory_space<vmem>>, vector<16x8xf32>
    %15 = arith.truncf %14 : vector<16x8xf32> to vector<16x8xbf16>
    %c0_15 = arith.constant 0 : index
    %c0_16 = arith.constant 0 : index
    %16 = vector.load %arg8[%c0_15, %c0_16] : memref<8x32xbf16, #tpu.memory_space<vmem>>, vector<8x32xbf16>
    %cst_17 = arith.constant dense<0.000000e+00> : vector<16x32xf32>
    %17 = tpu.matmul %15, %16, %cst_17 {dimension_numbers = #tpu.dot_dimension_numbers<[1], [0], [0], [1], [0, 0, 1, 1], [], []>} : vector<16x8xbf16>, vector<8x32xbf16>, vector<16x32xf32> -> vector<16x32xf32>
    %18 = arith.addf %13, %17 : vector<16x32xf32>
    %c0_18 = arith.constant 0 : index
    %c0_19 = arith.constant 0 : index
    %19 = vector.load %arg9[%c0_18, %c0_19] : memref<1x32xf32, #tpu.memory_space<vmem>>, vector<1x32xf32>
    %20 = vector.broadcast %19 : vector<1x32xf32> to vector<16x32xf32>
    %21 = arith.addf %18, %20 : vector<16x32xf32>
    %22 = arith.negf %21 : vector<16x32xf32>
    %23 = math.exp %22 : vector<16x32xf32>
    %cst_20 = arith.constant 1.000000e+00 : f32
    %24 = vector.broadcast %cst_20 : f32 to vector<16x32xf32>
    %25 = arith.addf %24, %23 : vector<16x32xf32>
    %26 = arith.divf %24, %25 : vector<16x32xf32>
    %27 = arith.mulf %21, %26 : vector<16x32xf32>
    %28 = arith.truncf %27 : vector<16x32xf32> to vector<16x32xbf16>
    %c0_21 = arith.constant 0 : index
    %c0_22 = arith.constant 0 : index
    %29 = vector.load %arg10[%c0_21, %c0_22] : memref<32x32xbf16, #tpu.memory_space<vmem>>, vector<32x32xbf16>
    %cst_23 = arith.constant dense<0.000000e+00> : vector<16x32xf32>
    %30 = tpu.matmul %28, %29, %cst_23 {dimension_numbers = #tpu.dot_dimension_numbers<[1], [0], [0], [1], [0, 0, 1, 1], [], []>} : vector<16x32xbf16>, vector<32x32xbf16>, vector<16x32xf32> -> vector<16x32xf32>
    %c0_24 = arith.constant 0 : index
    %c0_25 = arith.constant 0 : index
    %31 = vector.load %arg11[%c0_24, %c0_25] : memref<1x32xf32, #tpu.memory_space<vmem>>, vector<1x32xf32>
    %32 = vector.broadcast %31 : vector<1x32xf32> to vector<16x32xf32>
    %33 = arith.addf %30, %32 : vector<16x32xf32>
    %34 = arith.negf %33 : vector<16x32xf32>
    %35 = math.exp %34 : vector<16x32xf32>
    %cst_26 = arith.constant 1.000000e+00 : f32
    %36 = vector.broadcast %cst_26 : f32 to vector<16x32xf32>
    %37 = arith.addf %36, %35 : vector<16x32xf32>
    %38 = arith.divf %36, %37 : vector<16x32xf32>
    %39 = arith.mulf %33, %38 : vector<16x32xf32>
    %40 = arith.truncf %39 : vector<16x32xf32> to vector<16x32xbf16>
    %c0_27 = arith.constant 0 : index
    %c0_28 = arith.constant 0 : index
    %41 = vector.load %arg12[%c0_27, %c0_28] : memref<32x128xbf16, #tpu.memory_space<vmem>>, vector<32x128xbf16>
    %cst_29 = arith.constant dense<0.000000e+00> : vector<16x128xf32>
    %42 = tpu.matmul %40, %41, %cst_29 {dimension_numbers = #tpu.dot_dimension_numbers<[1], [0], [0], [1], [0, 0, 1, 1], [], []>} : vector<16x32xbf16>, vector<32x128xbf16>, vector<16x128xf32> -> vector<16x128xf32>
    %c0_30 = arith.constant 0 : index
    %c0_31 = arith.constant 0 : index
    %43 = vector.load %arg13[%c0_30, %c0_31] : memref<1x128xf32, #tpu.memory_space<vmem>>, vector<1x128xf32>
    %44 = vector.broadcast %43 : vector<1x128xf32> to vector<16x128xf32>
    %45 = arith.addf %42, %44 : vector<16x128xf32>
    %c0_32 = arith.constant 0 : index
    %c0_33 = arith.constant 0 : index
    %46 = vector.load %arg14[%c0_32, %c0_33] : memref<16x128xf32, #tpu.memory_space<vmem>>, vector<16x128xf32>
    tpu.vector_store %arg14[%c0_32, %c0_33], %45 {strides = array<i32>} : memref<16x128xf32, #tpu.memory_space<vmem>>, vector<16x128xf32>,
    return
  }
  func.func @transform_0(%arg0: i32) -> (i32, i32) {
    %c0_i32 = arith.constant 0 : i32
    %c0_i32_0 = arith.constant 0 : i32
    return %arg0, %c0_i32 : i32, i32
  }
  func.func @transform_1(%arg0: i32) -> (i32, i32) {
    %c0_i32 = arith.constant 0 : i32
    %c0_i32_0 = arith.constant 0 : i32
    return %arg0, %c0_i32 : i32, i32
  }
  func.func @transform_2(%arg0: i32) -> (i32, i32) {
    %c0_i32 = arith.constant 0 : i32
    %c0_i32_0 = arith.constant 0 : i32
    return %arg0, %c0_i32 : i32, i32
  }
  func.func @transform_3(%arg0: i32) -> (i32, i32) {
    %c0_i32 = arith.constant 0 : i32
    %c0_i32_0 = arith.constant 0 : i32
    return %arg0, %c0_i32 : i32, i32
  }
  func.func @transform_4(%arg0: i32) -> (i32, i32) {
    %c0_i32 = arith.constant 0 : i32
    %c0_i32_0 = arith.constant 0 : i32
    %c0_i32_1 = arith.constant 0 : i32
    return %c0_i32, %c0_i32_0 : i32, i32
  }
  func.func @transform_5(%arg0: i32) -> (i32, i32) {
    %c0_i32 = arith.constant 0 : i32
    %c0_i32_0 = arith.constant 0 : i32
    %c0_i32_1 = arith.constant 0 : i32
    return %c0_i32, %c0_i32_0 : i32, i32
  }
  func.func @transform_6(%arg0: i32) -> (i32, i32) {
    %c0_i32 = arith.constant 0 : i32
    %c0_i32_0 = arith.constant 0 : i32
    %c0_i32_1 = arith.constant 0 : i32
    return %c0_i32, %c0_i32_0 : i32, i32
  }
  func.func @transform_7(%arg0: i32) -> (i32, i32) {
    %c0_i32 = arith.constant 0 : i32
    %c0_i32_0 = arith.constant 0 : i32
    %c0_i32_1 = arith.constant 0 : i32
    return %c0_i32, %c0_i32_0 : i32, i32
  }
  func.func @transform_8(%arg0: i32) -> (i32, i32) {
    %c0_i32 = arith.constant 0 : i32
    %c0_i32_0 = arith.constant 0 : i32
    %c0_i32_1 = arith.constant 0 : i32
    return %c0_i32, %c0_i32_0 : i32, i32
  }
  func.func @transform_9(%arg0: i32) -> (i32, i32) {
    %c0_i32 = arith.constant 0 : i32
    %c0_i32_0 = arith.constant 0 : i32
    %c0_i32_1 = arith.constant 0 : i32
    return %c0_i32, %c0_i32_0 : i32, i32
  }
  func.func @transform_10(%arg0: i32) -> (i32, i32) {
    %c0_i32 = arith.constant 0 : i32
    %c0_i32_0 = arith.constant 0 : i32
    %c0_i32_1 = arith.constant 0 : i32
    return %c0_i32, %c0_i32_0 : i32, i32
  }
  func.func @transform_11(%arg0: i32) -> (i32, i32) {
    %c0_i32 = arith.constant 0 : i32
    %c0_i32_0 = arith.constant 0 : i32
    %c0_i32_1 = arith.constant 0 : i32
    return %c0_i32, %c0_i32_0 : i32, i32
  }
  func.func @transform_12(%arg0: i32) -> (i32, i32) {
    %c0_i32 = arith.constant 0 : i32
    %c0_i32_0 = arith.constant 0 : i32
    %c0_i32_1 = arith.constant 0 : i32
    return %c0_i32, %c0_i32_0 : i32, i32
  }
  func.func @transform_13(%arg0: i32) -> (i32, i32) {
    %c0_i32 = arith.constant 0 : i32
    %c0_i32_0 = arith.constant 0 : i32
    return %arg0, %c0_i32 : i32, i32
  }
}

</mosaic_0001>

<bundles_post_ra>
// kernel: edge_model_forward.1
= control target key start
LH: loop header
LB: loop body
LE: loop exit
PB: predicated region body
PF: predicated region fallthrough
CT: control target
= control target key end

     0   :  { %v623_v1 = vmov 0.0   ;;  %vm624_vm0 = vmmov 0   ;;  %vm246_vm1 = vcmask 1043456   ;;  %vm72_vm2 = vcmask 261120   ;;  %s795_s0 = inlined_call_operand.vmem [shape: f32[16,32], index: 0, kind: input, shape index: {}]   ;;  %s796_s1 = inlined_call_operand.vmem [shape: f32[16,32], index: 1, kind: input, shape index: {}]   ;;  %s797_s2 = inlined_call_operand.vmem [shape: f32[16,32], index: 2, kind: input, shape index: {}]   ;;  %s798_s3 = inlined_call_operand.vmem [shape: f32[16,8], index: 3, kind: input, shape index: {}]   ;;  %s799_s4 = inlined_call_operand.vmem [shape: bf16[32,32], index: 4, kind: input, shape index: {}]   ;;  %s800_s5 = inlined_call_operand.vmem [shape: bf16[32,32], index: 5, kind: input, shape index: {}]   ;;  %s801_s6 = inlined_call_operand.vmem [shape: bf16[32,32], index: 6, kind: input, shape index: {}]   ;;  %s802_s7 = inlined_call_operand.vmem [shape: bf16[8,32], index: 7, kind: input, shape index: {}]   ;;  %s803_s8 = inlined_call_operand.vmem [shape: f32[1,32], index: 8, kind: input, shape index: {}]   ;;  %s804_s9 = inlined_call_operand.vmem [shape: bf16[32,32], index: 9, kind: input, shape index: {}]   ;;  %s805_s10 = inlined_call_operand.vmem [shape: f32[1,32], index: 10, kind: input, shape index: {}]   ;;  %s806_s11 = inlined_call_operand.vmem [shape: bf16[32,128], index: 11, kind: input, shape index: {}]   ;;  %s807_s12 = inlined_call_operand.vmem [shape: f32[1,128], index: 12, kind: input, shape index: {}]   ;;  %s808_s13 = inlined_call_operand.hbm [shape: f32[16,128], index: 13, kind: output, shape index: {}]  }
   0x1   :  { %v575_v0 = vld [vmem:[%s800_s5 + $0x8] sm:$0xff]   ;;  %524 = vmatprep.subr.bf16.mxu0 %v623_v1  ;;  %532 = vmatprep.subr.bf16.mxu1 %v623_v1  ;;  %v577_v3 = vld [vmem:[%s800_s5] sm:$0xff]  }
   0x2   :  { %v576_v2 = vld [vmem:[%s799_s4 + $0x8] sm:$0xff]   ;;  %525 = vmatpush3.bf16.msra.mxu0 %v575_v0  ;;  %528 = vmatprep.mubr.msk.bf16.mxu0 %vm624_vm0, %v623_v1  ;;  %v578_v4 = vld [vmem:[%s799_s4] sm:$0xff]  }
   0x3   :  { %533 = vmatpush3.bf16.msra.mxu1 %v576_v2  ;;  %526 = vmatprep.subr.bf16.mxu0 %v623_v1  ;;  %v53_v5 = vld [vmem:[%s796_s1] sm:$0xff]  ;;  %v54_v6 = vld [vmem:[%s796_s1 + $0x8] sm:$0xff] }
   0x4   :  { %534 = vmatprep.subr.bf16.mxu1 %v623_v1  ;;  %536 = vmatprep.mubr.msk.bf16.mxu1 %vm624_vm0, %v623_v1  ;;  %v46_v7 = vld [vmem:[%s795_s0] sm:$0xff]  ;;  %v55_v8 = vpack.c.bf16 %v54_v6, %v53_v5  ;;  %v47_v9 = vld [vmem:[%s795_s0 + $0x8] sm:$0xff] }
   0x5   :  { %v48_v10 = vpack.c.bf16 %v47_v9, %v46_v7  ;;  %v579_v11 = vld [vmem:[%s801_s6 + $0x8] sm:$0xff]   ;;  %v241_v12 = vld [vmem:[%s802_s7] sm:$0xf] }
   0x6   :  { %527 = vmatpush3.bf16.msra.mxu0 %v577_v3  ;;  %v248_v13 = vsel %vm246_vm1, %v241_v12, 0  ;;  %v580_v14 = vld [vmem:[%s801_s6] sm:$0xff]   ;;  %v174_v16 = vld [vmem:[%s797_s2 + $0x8] sm:$0xff] }
   0x7   :  { %535 = vmatpush3.bf16.msra.mxu1 %v578_v4  ;;  %540 = vmatprep.subr.bf16.mxu0 %v623_v1  ;;  %v173_v15 = vld [vmem:[%s797_s2] sm:$0xff]  ;;  %v239_v18 = vld [vmem:[%s798_s3 + $0x8] sm:$0xff] }
   0x8   :  { %548 = vmatprep.subr.bf16.mxu1 %v623_v1  ;;  %v238_v17 = vld [vmem:[%s798_s3] sm:$0xff] }
   0x9   :  { %529 = vmatmul.mubr.msk.bf16.vlgmr.msra.gmra.mxu0 %vm72_vm2, %v55_v8 }
   0xa   :  { %537 = vmatmul.mubr.msk.bf16.vlgmr.msra.gmra.mxu1 %vm72_vm2, %v48_v10  ;;  %541 = vmatpush3.bf16.msra.mxu0 %v579_v11 }
   0xb   :  { %549 = vmatpush3.bf16.msra.mxu1 %v248_v13  ;;  %542 = vmatprep.subr.bf16.mxu0 %v623_v1 }
   0xc   :  { %18 = vsyncpa [#allocation3], 0  ;;  %544 = vmatprep.mubr.msk.bf16.mxu0 %vm624_vm0, %v623_v1  ;;  %550 = vmatprep.mubr.msk.bf16.mxu1 %vm624_vm0, %v623_v1  ;;  %v175_v19 = vpack.c.bf16 %v174_v16, %v173_v15  ;;  %v240_v20 = vpack.c.bf16 %v239_v18, %v238_v17  ;;  %vm242_vm3 = vcmask 64512   ;;  %v581_v21 = vld [vmem:[%s804_s9 + $0x8] sm:$0xff]   ;;  %v582_v22 = vld [vmem:[%s804_s9] sm:$0xff]   ;;  %s625_s4 = smov [#allocation2]  }
   0xd   :  { %562 = vmatprep.subr.bf16.mxu1 %v623_v1  ;;  %v494_v35 = vld [vmem:[%s803_s8] ss:$0 sm:$0xff]  ;;  %v583_v59 = vld [vmem:[%s806_s11 + $0x8] sm:$0xff]   ;;  %s473_s22 = sshll.u32 %s625_s4, 4  ;;  %s474_s22 = int_to_ptr.vmem [resolvable:$true] %s473_s22 }
   0xe   :  { %543 = vmatpush3.bf16.msra.mxu0 %v580_v14  ;;  %v584_v60 = vld [vmem:[%s806_s11] sm:$0xff]   ;;  %s601_s23 = scalar_lea.vmem %s474_s22, 256  ;;  %p606_p1 = scmp.lt.s32.totalorder %s474_s22, %s474_s22 }
   0xf   :  { %554 = vmatprep.subr.bf16.mxu0 %v623_v1  ;;  %v497_v61 = vld [vmem:[%s805_s10] ss:$0 sm:$0xff]  ;;  %p602_p0 = scmp.ne.s32.totalorder %s474_s22, %s601_s23  ;;  %p607_p2 = scmp.lt.s32.totalorder %s601_s23, %s601_s23 }
  0x10   :  { %v503_v15 = vld [vmem:[%s807_s12] ss:$0 sm:$0xff] }
  0x11   :  { %545 = vmatmul.mubr.msk.bf16.vlgmr.msra.gmra.mxu0 %vm72_vm2, %v175_v19  ;;  %p608_p3 = por %p607_p2, %p606_p1 }
  0x12   :  { %551 = vmatmul.mubr.msk.bf16.vlgmr.msra.gmra.mxu1 %vm242_vm3, %v240_v20  ;;  %558 = vmatprep.mubr.msk.bf16.mxu0 %vm624_vm0, %v623_v1 }
  0x13   :  { %566 = vmatprep.mubr.msk.bf16.mxu1 %vm624_vm0, %v623_v1  ;;  %555 = vmatpush3.bf16.msra.mxu0 %v581_v21  ;;  %p609_p4 = pnand %p608_p3, %p602_p0 }
  0x14   :  { %556 = vmatprep.subr.bf16.mxu0 %v623_v1  ;;  %563 = vmatpush3.bf16.msra.mxu1 %v583_v59 }
  0x15   :  { %564 = vmatprep.subr.bf16.mxu1 %v623_v1 }
  0x17   :  { %557 = vmatpush3.bf16.msra.mxu0 %v582_v22 }
  0x18   :  { %565 = vmatpush3.bf16.msra.mxu1 %v584_v60 }
  0xc9   :  { %v110_v23 = vpop.f32.mrf.mxu0 }
  0xca   :  { %v166_v24 = vpop.f32.mrf.mxu1 }
  0xcb   :  { %v530_v25 = vpop.f32.mrf.mxu0  ;;  %v167_v30 = vadd.f32 %v166_v24, %v110_v23 }
  0xcc   :  { %v538_v26 = vpop.f32.mrf.mxu1 }
  0xcd   :  { %v113_v27 = vpop.f32.mrf.mxu0 }
  0xce   :  { %v169_v28 = vpop.f32.mrf.mxu1 }
  0xcf   :  { %v531_v29 = vpop.f32.mrf.mxu0  ;;  %v170_v37 = vadd.f32 %v169_v28, %v113_v27 }
  0xd0   :  { %v539_v31 = vpop.f32.mrf.mxu1 }
  0xd1   :  { %v229_v32 = vpop.f32.mrf.mxu0 }
  0xd2   :  { %v236_v33 = vadd.f32 %v229_v32, %v167_v30  ;;  %v284_v34 = vpop.f32.mrf.mxu1 }
  0xd3   :  { %v546_v36 = vpop.f32.mrf.mxu0 }
  0xd4   :  { %v291_v38 = vadd.f32 %v284_v34, %v236_v33  ;;  %v552_v39 = vpop.f32.mrf.mxu1 }
  0xd5   :  { %v232_v40 = vpop.f32.mrf.mxu0 }
  0xd6   :  { %v300_v41 = vadd.f32 %v494_v35, %v291_v38  ;;  %v237_v42 = vadd.f32 %v232_v40, %v170_v37  ;;  %v287_v43 = vpop.f32.mrf.mxu1 }
  0xd7   :  { %v547_v44 = vpop.f32.mrf.mxu0 }
  0xd8   :  { %v495_v45 = vmul.f32 -1.442695, %v300_v41  ;;  %v292_v46 = vadd.f32 %v287_v43, %v237_v42  ;;  %v553_v47 = vpop.f32.mrf.mxu1 }
  0xda   :  { %585 = vpow2.f32 %v495_v45  ;;  %v301_v48 = vadd.f32 %v494_v35, %v292_v46 }
  0xdc   :  { %v496_v49 = vmul.f32 -1.442695, %v301_v48 }
  0xde   :  { %587 = vpow2.f32 %v496_v49 }
  0xe7   :  { %v586_v50 = vpop.eup %585 }
  0xe8   :  { %v308_v51 = vadd.f32 1.0, %v586_v50 }
  0xea   :  { %589 = vrcp.f32 %v308_v51 }
  0xeb   :  { %v588_v52 = vpop.eup %587 }
  0xec   :  { %v309_v53 = vadd.f32 1.0, %v588_v52 }
  0xee   :  { %591 = vrcp.f32 %v309_v53 }
  0xf7   :  { %v590_v54 = vpop.eup %589 }
  0xf8   :  { %v314_v56 = vmul.f32 %v590_v54, %v300_v41 }
  0xfb   :  { %v592_v55 = vpop.eup %591 }
  0xfc   :  { %v315_v57 = vmul.f32 %v592_v55, %v301_v48 }
  0xfe   :  { %v316_v58 = vpack.c.bf16 %v315_v57, %v314_v56 }
 0x100   :  { %559 = vmatmul.mubr.msk.bf16.vlgmr.msra.gmra.mxu0 %vm72_vm2, %v316_v58 }
 0x1c0   :  { %v377_v62 = vpop.f32.mrf.mxu0 }
 0x1c1   :  { %v378_v63 = vadd.f32 %v497_v61, %v377_v62 }
 0x1c2   :  { %v560_v0 = vpop.f32.mrf.mxu0 }
 0x1c3   :  { %v501_v2 = vmul.f32 -1.442695, %v378_v63 }
 0x1c4   :  { %v380_v3 = vpop.f32.mrf.mxu0 }
 0x1c5   :  { %593 = vpow2.f32 %v501_v2  ;;  %v381_v4 = vadd.f32 %v497_v61, %v380_v3 }
 0x1c6   :  { %v561_v5 = vpop.f32.mrf.mxu0 }
 0x1c7   :  { %v502_v6 = vmul.f32 -1.442695, %v381_v4 }
 0x1c9   :  { %595 = vpow2.f32 %v502_v6 }
 0x1d2   :  { %v594_v1 = vpop.eup %593 }
 0x1d3   :  { %v390_v7 = vadd.f32 1.0, %v594_v1 }
 0x1d5   :  { %597 = vrcp.f32 %v390_v7 }
 0x1d6   :  { %v596_v8 = vpop.eup %595 }
 0x1d7   :  { %v391_v9 = vadd.f32 1.0, %v596_v8 }
 0x1d9   :  { %599 = vrcp.f32 %v391_v9 }
 0x1e2   :  { %v598_v10 = vpop.eup %597 }
 0x1e3   :  { %v396_v12 = vmul.f32 %v598_v10, %v378_v63 }
 0x1e6   :  { %v600_v11 = vpop.eup %599 }
 0x1e7   :  { %v397_v13 = vmul.f32 %v600_v11, %v381_v4 }
 0x1e9   :  { %v398_v14 = vpack.c.bf16 %v397_v13, %v396_v12 }
 0x1eb   :  { %567 = vmatmul.mubr.msk.bf16.vlgmr.msra.gmra.mxu1 %vm72_vm2, %v398_v14 }
 0x2ab   :  { %v459_v16 = vpop.f32.mrf.mxu1 }
 0x2ac   :  { %v460_v17 = vadd.f32 %v503_v15, %v459_v16 }
 0x2ad   :  { %v568_v18 = vpop.f32.mrf.mxu1 }
 0x2ae   :  { %466 = vst [vmem:[#allocation2] sm:$0xff] %v460_v17 }
 0x2af   :  { %v462_v19 = vpop.f32.mrf.mxu1 }
 0x2b0   :  { %v463_v20 = vadd.f32 %v503_v15, %v462_v19 }
 0x2b1   :  { %v569_v21 = vpop.f32.mrf.mxu1 }
 0x2b2   :  { %467 = vst [vmem:[#allocation2 + $0x8] sm:$0xff] %v463_v20 }
 0x2b3   :  { %612 = shalt.err (!%p609_p4)
}
 0x2b4   :  { %s626_s24 = smov 128   ;;  %s627_s12 = smov 8  }
 0x2b5   :  { %479 = dma.vmem_to_hbm [thread:$0]  %s474_s22, 256, %s808_s13, [#allocation3], %s626_s24, %s626_s24, %s627_s12  }
 0x2b6   :  { %621 = dma.done.wait [#allocation3], 256  }
 0x2b7   :  { %622 = vsyncadd [#allocation3], 4294967040 }
 0x2b8   :  { %483 = vsyncpa [#allocation3], 1 }

</bundles_post_ra>
